<compile_context>
chip_gen: v7x
topology: tpu7x:2x2x1
jax: 0.10.0
libtpu: 0.0.40
codegen_flags: <defaults>
</compile_context>

<pallas_src>
import math

import jax
import jax.numpy as jnp
from jax.experimental import pallas as pl
from jax.experimental.pallas import tpu as pltpu


def _round_up(n: int, m: int) -> int:
    return ((n + m - 1) // m) * m


def _layer_scale_kernel(x_ref, gamma_ref, o_ref):
    # (tr, D_eff) * (1, D_eff): single lane-dense VPU broadcast multiply.
    o_ref[...] = (x_ref[...] * gamma_ref[...]).astype(o_ref.dtype)


def _scale_2d(x2d: jax.Array, gamma_row: jax.Array, *, vmem_budget_bytes: int) -> jax.Array:
    """out[r, c] = x2d[r, c] * gamma_row[0, c] for a 2-D view of x."""
    rows, d_eff = x2d.shape
    itemsize = jnp.dtype(x2d.dtype).itemsize
    # Sublane packing: 8 rows/vreg at 32-bit, 16 at 16-bit, 32 at 8-bit.
    row_align = 8 * max(1, 4 // itemsize)

    if rows <= row_align:
        # Single full-array block (block shape == array shape, so the (8, 128)
        # divisibility constraint is waived).
        tr = rows
    else:
        # Direct byte-based sizing: largest tile whose double-buffered in+out
        # footprint (4 resident blocks) fits the budget.
        tr = (vmem_budget_bytes // (4 * d_eff * itemsize)) // row_align * row_align
        tr = max(tr, row_align)
        if tr >= rows:
            # Keep >= 2 grid steps so dimension_semantics=("parallel",) can
            # shard the row axis across both TensorCores on v7x.
            tr = max(row_align, _round_up((rows + 1) // 2, row_align))

    grid = pl.cdiv(rows, tr)
    # Resident VMEM: double-buffered x + out blocks, resident gamma, plus a
    # little headroom for Mosaic internal scratch.
    vmem_limit = 4 * tr * d_eff * itemsize + d_eff * itemsize + (4 << 20)

    return pl.pallas_call(
        _layer_scale_kernel,
        out_shape=jax.ShapeDtypeStruct((rows, d_eff), x2d.dtype),
        grid_spec=pltpu.PrefetchScalarGridSpec(
            num_scalar_prefetch=0,
            grid=(grid,),
            in_specs=[
                pl.BlockSpec((tr, d_eff), lambda i: (i, 0)),
                # gamma: whole array resident in VMEM for the entire kernel.
                pl.BlockSpec(memory_space=pltpu.MemorySpace.VMEM),
            ],
            out_specs=pl.BlockSpec((tr, d_eff), lambda i: (i, 0)),
        ),
        compiler_params=pltpu.CompilerParams(
            # Row axis is embarrassingly parallel -> shards across TCs on v7x.
            dimension_semantics=("parallel",),
            vmem_limit_bytes=vmem_limit,
        ),
    )(x2d, gamma_row)


def layer_scale(
    x: jax.Array,
    gamma: jax.Array,
    *,
    vmem_budget_bytes: int = 24 * 1024 * 1024,
    max_fold: int = 32,
) -> jax.Array:
    """Applies per-channel scaling: out = x * gamma (gamma broadcast over last dim)."""
    orig_shape = x.shape
    D = orig_shape[-1]
    assert gamma.shape == (D,)
    gamma = gamma.astype(x.dtype)  # avoid implicit promote/downcast inside the kernel
    rows = math.prod(orig_shape[:-1]) if len(orig_shape) > 1 else 1
    x2d = x.reshape(rows, D)  # layout-preserving, free

    # Fold factor: pack K tokens per row so the lane axis (K*D) is a multiple of
    # 128 and stores are unmasked full-lane vst.  K = 128/gcd(D,128) <= 128.
    K = 128 // math.gcd(D, 128)
    if K > max_fold:
        # Awkward (e.g. odd) D: the fold would need up to 128 tokens per row and
        # a large ragged tail; masked stores are cheaper than the extra copies.
        K = 1
    else:
        # Widen the fold so blocks are >= ~512 lanes wide (helps v7x most) while
        # keeping any ragged tail small.
        while K > 1 and K * D < 512 and 2 * K <= max_fold:
            K *= 2

    if K == 1 or rows < K:
        # Lane axis already a multiple of 128, or too few rows to fold: run on
        # the unpadded 2-D view; Pallas masks the ragged last row-block itself.
        out2d = _scale_2d(x2d, gamma.reshape(1, D), vmem_budget_bytes=vmem_budget_bytes)
        return out2d.reshape(orig_shape)

    gamma_eff = jnp.tile(gamma, K).reshape(1, K * D)
    rows_main = (rows // K) * K
    if rows_main == rows:
        xf = x2d.reshape(rows // K, K * D)  # layout-preserving, free
        out = _scale_2d(xf, gamma_eff, vmem_budget_bytes=vmem_budget_bytes)
        return out.reshape(orig_shape)

    # Ragged token count: lane-dense kernel over the K-divisible prefix, tiny
    # (< K rows) unfolded tail handled by XLA.  No full-tensor pad / out-slice.
    xf = x2d[:rows_main].reshape(rows_main // K, K * D)
    main = _scale_2d(xf, gamma_eff, vmem_budget_bytes=vmem_budget_bytes).reshape(rows_main, D)
    tail = x2d[rows_main:] * gamma
    return jnp.concatenate([main, tail], axis=0).reshape(orig_shape)


if __name__ == "__main__":
    # Module config (matches LayerScale.__init__): dim=32, init_values=1e-5
    dim = 32
    init_values = 1e-5
    batch, seq = 2, 8

    key = jax.random.PRNGKey(0)
    x = jax.random.normal(key, (batch, seq, dim), dtype=jnp.float32)

    # Deterministic parameter init: gamma = init_values * ones(dim)
    gamma = init_values * jnp.ones((dim,), dtype=jnp.float32)

    out = jax.block_until_ready(layer_scale(x, gamma))
    ref = x * gamma
    assert out.shape == x.shape
    assert out.dtype == x.dtype
    assert jnp.allclose(out, ref, atol=1e-7, rtol=1e-6)

    # Ragged token count (ViT's 197 tokens) exercises the folded-prefix + tiny
    # XLA-tail path (D = 32 is not a multiple of 128).
    x2 = jax.random.normal(jax.random.PRNGKey(1), (batch, 197, dim), dtype=jnp.float32)
    out2 = jax.block_until_ready(layer_scale(x2, gamma))
    assert jnp.allclose(out2, x2 * gamma, atol=1e-7, rtol=1e-6)

    # D % 128 == 0 with ragged rows and bf16 x / f32 gamma: exercises the
    # no-pad Pallas-masked path and the dtype-cast fix.
    x3 = jax.random.normal(jax.random.PRNGKey(2), (3, 197, 384), dtype=jnp.bfloat16)
    g3 = init_values * jnp.ones((384,), dtype=jnp.float32)
    out3 = jax.block_until_ready(layer_scale(x3, g3))
    assert out3.shape == x3.shape
    assert out3.dtype == x3.dtype
    assert jnp.allclose(
        out3.astype(jnp.float32),
        (x3 * g3.astype(jnp.bfloat16)).astype(jnp.float32),
        atol=1e-6,
        rtol=1e-2,
    )

    print("KERNEL_OK")
</pallas_src>

<mosaic_0001>
module attributes {stable_mosaic.version = 11 : i64} {
  func.func @_layer_scale_kernel(%arg0: i32, %arg1: memref<1x512xf32, #tpu.memory_space<vmem>>, %arg2: memref<1x512xf32, #tpu.memory_space<vmem>>, %arg3: memref<1x512xf32, #tpu.memory_space<vmem>>) attributes {dimension_semantics = [#tpu.dimension_semantics<parallel>], iteration_bounds = array<i64: 1>, scalar_prefetch = 0 : i64, scratch_operands = 0 : i64, tpu.core_type = #tpu.core_type<tc>, window_params = [{transform_indices = @transform_0, window_bounds = array<i64: 1, 512>}, {pipeline_mode = #tpu.pipeline_mode<synchronous>, transform_indices = @transform_1, window_bounds = array<i64: 1, 512>}, {transform_indices = @transform_2, window_bounds = array<i64: 1, 512>}]} {
    %c0 = arith.constant 0 : index
    %c0_0 = arith.constant 0 : index
    %0 = vector.load %arg1[%c0, %c0_0] : memref<1x512xf32, #tpu.memory_space<vmem>>, vector<1x512xf32>
    %c0_1 = arith.constant 0 : index
    %c0_2 = arith.constant 0 : index
    %1 = vector.load %arg2[%c0_1, %c0_2] : memref<1x512xf32, #tpu.memory_space<vmem>>, vector<1x512xf32>
    %2 = arith.mulf %0, %1 : vector<1x512xf32>
    %c0_3 = arith.constant 0 : index
    %c0_4 = arith.constant 0 : index
    %3 = vector.load %arg3[%c0_3, %c0_4] : memref<1x512xf32, #tpu.memory_space<vmem>>, vector<1x512xf32>
    tpu.vector_store %arg3[%c0_3, %c0_4], %2 {strides = array<i32>} : memref<1x512xf32, #tpu.memory_space<vmem>>, vector<1x512xf32>,
    return
  }
  func.func @transform_0(%arg0: i32) -> (i32, i32) {
    %c0_i32 = arith.constant 0 : i32
    %c0_i32_0 = arith.constant 0 : i32
    return %arg0, %c0_i32 : i32, i32
  }
  func.func @transform_1(%arg0: i32) -> (i32, i32) {
    %c0_i32 = arith.constant 0 : i32
    %c0_i32_0 = arith.constant 0 : i32
    %c0_i32_1 = arith.constant 0 : i32
    return %c0_i32, %c0_i32_0 : i32, i32
  }
  func.func @transform_2(%arg0: i32) -> (i32, i32) {
    %c0_i32 = arith.constant 0 : i32
    %c0_i32_0 = arith.constant 0 : i32
    return %arg0, %c0_i32 : i32, i32
  }
}

</mosaic_0001>

<bundles_post_ra>
// kernel: tpu_custom_call.1
= control target key start
LH: loop header
LB: loop body
LE: loop exit
PB: predicated region body
PF: predicated region fallthrough
CT: control target
= control target key end

     0   :  { %7 = vsyncpa [#allocation3], 0  ;;  %s189_s0 = inlined_call_operand.hbm [shape: f32[1,512], index: 0, kind: input, shape index: {}]   ;;  %s190_s1 = inlined_call_operand.hbm [shape: f32[1,512], index: 1, kind: input, shape index: {}]   ;;  %s191_s2 = inlined_call_operand.hbm [shape: f32[1,512], index: 2, kind: output, shape index: {}]  }
   0x1   :  { %8 = vsyncpa [#allocation6], 0 }
   0x2   :  { %9 = vsyncpa [#allocation4], 0  ;;  %s135_s9 = smov [#allocation2]   ;;  %s136_s11 = smov [#allocation5]  }
   0x3   :  { %s16_s10 = sshll.u32 %s135_s9, 4  ;;  %s26_s12 = sshll.u32 %s136_s11, 4  ;;  %s17_s10 = int_to_ptr.vmem [resolvable:$true] %s16_s10  ;;  %s27_s12 = int_to_ptr.vmem [resolvable:$true] %s26_s12 }
   0x4   :  { %s63_s15 = scalar_lea.hbm %s189_s0, 64 }
   0x5   :  { %p64_p0 = scmp.ne.s32.totalorder %s189_s0, %s63_s15  ;;  %p67_p1 = scmp.lt.u32.totalorder %s63_s15, %s189_s0 }
   0x7   :  { %p69_p2 = pnand %p67_p1, %p64_p0 }
   0x9   :  { %72 = shalt.err (!%p69_p2)
}
   0xa   :  { %s73_s20 = scalar_lea.vmem %s17_s10, 64  ;;  %p78_p4 = scmp.lt.s32.totalorder %s17_s10, %s17_s10 }
   0xb   :  { %p74_p3 = scmp.ne.s32.totalorder %s17_s10, %s73_s20  ;;  %p79_p5 = scmp.lt.s32.totalorder %s73_s20, %s73_s20 }
   0xd   :  { %p80_p6 = por %p79_p5, %p78_p4 }
   0xf   :  { %p81_p7 = pnand %p80_p6, %p74_p3 }
  0x11   :  { %84 = shalt.err (!%p81_p7)
}
  0x12   :  { %19 = dma.hbm_to_vmem [thread:$0]  %s189_s0, 64, %s17_s10, [#allocation3]  }
  0x13   :  { %s85_s25 = scalar_lea.hbm %s190_s1, 64 }
  0x14   :  { %p86_p8 = scmp.ne.s32.totalorder %s190_s1, %s85_s25  ;;  %p89_p9 = scmp.lt.u32.totalorder %s85_s25, %s190_s1 }
  0x16   :  { %p91_p10 = pnand %p89_p9, %p86_p8 }
  0x18   :  { %94 = shalt.err (!%p91_p10)
}
  0x19   :  { %s95_s30 = scalar_lea.vmem %s27_s12, 64  ;;  %p100_p12 = scmp.lt.s32.totalorder %s27_s12, %s27_s12 }
  0x1a   :  { %p96_p11 = scmp.ne.s32.totalorder %s27_s12, %s95_s30  ;;  %p101_p13 = scmp.lt.s32.totalorder %s95_s30, %s95_s30 }
  0x1c   :  { %p102_p0 = por %p101_p13, %p100_p12 }
  0x1e   :  { %p103_p1 = pnand %p102_p0, %p96_p11 }
  0x20   :  { %106 = shalt.err (!%p103_p1)
}
  0x21   :  { %29 = dma.hbm_to_vmem [thread:$0]  %s190_s1, 64, %s27_s12, [#allocation6]  }
  0x22   :  { %129 = dma.done.wait [#allocation3], 64  }
  0x23   :  { %130 = vsyncadd [#allocation3], 4294967232 }
  0x24   :  { %131 = dma.done.wait [#allocation6], 64  }
  0x25   :  { %132 = vsyncadd [#allocation6], 4294967232  ;;  %v39_v0 = vlaneseq  ;;  %s137_s4 = smov [#allocation7]   ;;  %v36_v1 = vld [vmem:[#allocation2] sm:$0xf] }
  0x26   :  { %s50_s5 = sshll.u32 %s137_s4, 4  ;;  %v37_v2 = vld [vmem:[#allocation5] sm:$0xf]  ;;  %s51_s5 = int_to_ptr.vmem [resolvable:$true] %s50_s5 }
  0x27   :  { %vm41_vm0 = vcmp.lt.s32.totalorder %v39_v0, 512  ;;  %v38_v3 = vmul.f32 %v37_v2, %v36_v1  ;;  %s107_s6 = scalar_lea.vmem %s51_s5, 64  ;;  %p112_p3 = scmp.lt.s32.totalorder %s51_s5, %s51_s5 }
  0x28   :  { %p108_p2 = scmp.ne.s32.totalorder %s51_s5, %s107_s6  ;;  %p113_p4 = scmp.lt.s32.totalorder %s107_s6, %s107_s6 }
  0x29   :  { %43 = vst.msk [vmem:[#allocation7] sm:$0xf] %vm41_vm0, %v38_v3 }
  0x2a   :  { %p114_p5 = por %p113_p4, %p112_p3 }
  0x2c   :  { %p115_p6 = pnand %p114_p5, %p108_p2 }
  0x2e   :  { %118 = shalt.err (!%p115_p6)
}
  0x2f   :  { %s119_s8 = scalar_lea.hbm %s191_s2, 64 }
  0x30   :  { %p120_p7 = scmp.ne.s32.totalorder %s191_s2, %s119_s8  ;;  %p123_p8 = scmp.lt.u32.totalorder %s119_s8, %s191_s2 }
  0x32   :  { %p125_p9 = pnand %p123_p8, %p120_p7 }
  0x34   :  { %128 = shalt.err (!%p125_p9)
}
  0x35   :  { %53 = dma.vmem_to_hbm [thread:$0]  %s51_s5, 64, %s191_s2, [#allocation4]  }
  0x36   :  { %133 = dma.done.wait [#allocation4], 64  }
  0x37   :  { %134 = vsyncadd [#allocation4], 4294967232 }
  0x38   :  { %57 = vsyncpa [#allocation3], 1 }
  0x39   :  { %58 = vsyncpa [#allocation6], 1 }
  0x3a   :  { %59 = vsyncpa [#allocation4], 1 }

</bundles_post_ra>
